<compile_context>
chip_gen: v7x
topology: tpu7x:2x2x1
jax: 0.10.0
libtpu: 0.0.40
codegen_flags: <defaults>
</compile_context>

<pallas_src>
import jax
import jax.numpy as jnp
from jax.experimental import pallas as pl
from jax.experimental.pallas import tpu as pltpu

E_CHAR = 50      # per the module: e_char = 50
KSIZE = 5        # per the module: kernel_size = 5
PAD_IDX = 0      # synthetic vocab: '<pad>' -> 0


def _fused_cnn_highway_kernel(ids_ref, tbl_ref, bconv_ref, wpg_ref, bpg_ref, out_ref):
    # ids_ref : (tn, l_out, K) int32   -- windowed char ids; tap-k values pre-offset by k*vocab
    # tbl_ref : (K*vocab, e_word) bf16 -- folded (emb_table @ conv_tap_k) tables, tap-major
    # bconv   : (1, e_word) f32        -- conv bias
    # wpg     : (e_word, 2*e_word) bf16-- fused [proj | gate] highway weight
    # bpg     : (1, 2*e_word) f32      -- fused highway bias
    tn, l_out, _ = ids_ref.shape
    kvocab = tbl_ref.shape[0]
    e_word = bconv_ref.shape[-1]

    ids = ids_ref[...]                                                  # (tn, l_out, K)
    iota = jax.lax.broadcasted_iota(jnp.int32, (tn, l_out, kvocab), 2)

    # Windowed one-hot: OR of K one-hots living in disjoint vocab ranges (the +k*vocab
    # offsets were added in the wrapper).  No slicing/concat of large tensors -- just
    # full-lane-width compares against size-1 lane slices of the ids tile.
    # Note: out-of-range char ids are not validated (PyTorch's nn.Embedding would error).
    hit = iota == ids[:, :, 0:1]
    for k in range(1, KSIZE):
        hit = jnp.logical_or(hit, iota == ids[:, :, k:k + 1])
    onehot = hit.astype(jnp.bfloat16)                                   # (tn, l_out, K*vocab)

    # Embedding lookup + Conv1d(k=5) fused into ONE MXU matmul (f32 accumulation).
    conv = jnp.einsum('nlj,jd->nld', onehot, tbl_ref[...],
                      preferred_element_type=jnp.float32)               # (tn, l_out, e_word)
    conv = jnp.maximum(conv + bconv_ref[...], 0.0)                      # bias + ReLU (f32)
    pooled = jnp.max(conv, axis=1)                                      # max-pool over time

    # Highway: fused [proj | gate] matmul, elementwise mix in f32.
    pg = jnp.dot(pooled.astype(jnp.bfloat16), wpg_ref[...],
                 preferred_element_type=jnp.float32) + bpg_ref[...]     # (tn, 2*e_word)
    proj = jnp.maximum(pg[:, :e_word], 0.0)
    gate = jax.nn.sigmoid(pg[:, e_word:])
    out = gate * proj + (1.0 - gate) * pooled

    # TODO(synk): nn.Dropout(p=0.3) is identity in eval mode; training-mode stochastic
    # dropout (pltpu.prng_seed + mask) is not implemented here.
    out_ref[...] = out.astype(out_ref.dtype)


def init_params(key, vocab_size, embed_size):
    """Deterministic synthetic parameters matching the module's shapes, pre-folded."""
    k1, k2, k3, k4, k5, k6, k7 = jax.random.split(key, 7)
    emb_table = jax.random.normal(k1, (vocab_size, E_CHAR), jnp.float32) * 0.1
    emb_table = emb_table.at[PAD_IDX].set(0.0)          # padding_idx row is zero

    # PyTorch Conv1d weight is (e_word, e_char, k); Linear weight is (out, in).
    w_conv = jax.random.normal(k2, (embed_size, E_CHAR, KSIZE), jnp.float32) * 0.1
    b_conv = jax.random.normal(k3, (1, embed_size), jnp.float32) * 0.1
    w_proj = jnp.transpose(jax.random.normal(k4, (embed_size, embed_size), jnp.float32) * 0.1)
    b_proj = jax.random.normal(k5, (1, embed_size), jnp.float32) * 0.1
    w_gate = jnp.transpose(jax.random.normal(k6, (embed_size, embed_size), jnp.float32) * 0.1)
    b_gate = jax.random.normal(k7, (1, embed_size), jnp.float32) * 0.1

    # Fold the char embedding into the conv taps: T_k[v, d] = sum_c emb[v, c] * W[d, c, k].
    # Because emb[PAD_IDX] == 0, padded chars still contribute exactly zero.
    taps = [emb_table @ w_conv[:, :, k].T for k in range(KSIZE)]   # each (vocab, e_word)
    fused_tbl = jnp.concatenate(taps, axis=0)                      # (K*vocab, e_word)

    # Fuse highway proj/gate into one matmul: pg = pooled @ w_pg + b_pg, then split.
    w_pg = jnp.concatenate([w_proj, w_gate], axis=1)               # (e_word, 2*e_word)
    b_pg = jnp.concatenate([b_proj, b_gate], axis=1)               # (1, 2*e_word)

    # MXU operands stored bf16 (f32 accumulation in-kernel); biases stay f32.
    return dict(fused_tbl=fused_tbl.astype(jnp.bfloat16),
                b_conv=b_conv,
                w_pg=w_pg.astype(jnp.bfloat16), b_pg=b_pg,
                vocab=vocab_size)


def _round_up(x, m):
    return ((x + m - 1) // m) * m


def model_embeddings_forward(input_ids, params):
    """input_ids: (sentence_length, batch_size, max_word_length) int32
       returns:   (sentence_length, batch_size, embed_size) float32"""
    sent_len, batch, m_word = input_ids.shape
    assert m_word >= KSIZE, "words must be padded to at least kernel_size=5 chars"
    e_word = params['b_conv'].shape[-1]
    vocab = params['vocab']
    kvocab = KSIZE * vocab
    l_out = m_word - KSIZE + 1

    n_words = sent_len * batch
    ids = input_ids.reshape(n_words, m_word).astype(jnp.int32)

    # Word tile: cap 256 (in-kernel footprint ~10-14 MiB, safe under every generation's
    # scoped-VMEM with the explicit limit below).  Guarantee >= 2 grid steps whenever
    # possible so v7x's two TensorCores both get work; padding to an even step count
    # would not reduce v7x time (ceil(steps/2)) and only wastes work on v5e/v6e.
    tn = min(256, max(8, _round_up(pl.cdiv(n_words, 2), 8)))
    n_pad = _round_up(n_words, tn)
    if n_pad != n_words:
        ids = jnp.pad(ids, ((0, n_pad - n_words), (0, 0)), constant_values=PAD_IDX)

    # Conv windowing on the int32 ids in the wrapper: ids_win[n, t, k] = ids[n, t+k] + k*vocab.
    # The +k*vocab offset folds the tap index into one flat one-hot axis, so the kernel
    # never slices or concatenates any large activation tensor.
    ids_win = jnp.stack([ids[:, k:k + l_out] + k * vocab for k in range(KSIZE)],
                        axis=-1)                                     # (n_pad, l_out, K)

    grid = (n_pad // tn,)

    flops = n_pad * (2 * l_out * kvocab * e_word        # fused lookup+conv matmul
                     + 2 * e_word * 2 * e_word)         # fused highway matmul
    bytes_accessed = (ids_win.size * 4
                      + params['fused_tbl'].size * 2 + params['w_pg'].size * 2
                      + params['b_conv'].size * 4 + params['b_pg'].size * 4
                      + n_pad * e_word * 4)
    cost = pl.CostEstimate(flops=flops, transcendentals=n_pad * e_word,
                           bytes_accessed=bytes_accessed)

    out = pl.pallas_call(
        _fused_cnn_highway_kernel,
        out_shape=jax.ShapeDtypeStruct((n_pad, e_word), jnp.float32),
        grid=grid,
        in_specs=[
            pl.BlockSpec((tn, l_out, KSIZE), lambda i: (i, 0, 0)),     # windowed char ids
            pl.BlockSpec((kvocab, e_word), lambda i: (0, 0)),          # folded emb@conv table
            pl.BlockSpec((1, e_word), lambda i: (0, 0)),               # conv bias
            pl.BlockSpec((e_word, 2 * e_word), lambda i: (0, 0)),      # [proj|gate] W
            pl.BlockSpec((1, 2 * e_word), lambda i: (0, 0)),           # [proj|gate] b
        ],
        out_specs=pl.BlockSpec((tn, e_word), lambda i: (i, 0)),
        compiler_params=pltpu.CompilerParams(
            dimension_semantics=("parallel",),
            vmem_limit_bytes=32 * 1024 * 1024),        # raises v5e's 16 MiB default; no-op v6e/v7x
        cost_estimate=cost,
    )(ids_win, params['fused_tbl'], params['b_conv'],
      params['w_pg'], params['b_pg'])

    return out[:n_words].reshape(sent_len, batch, e_word)


if __name__ == "__main__":
    key = jax.random.PRNGKey(0)
    k_ids, k_params = jax.random.split(key)

    vocab_size = 30
    embed_size = 32          # e_word
    sent_len, batch, m_word = 8, 2, 12

    input_ids = jax.random.randint(
        k_ids, (sent_len, batch, m_word), 0, vocab_size, dtype=jnp.int32)
    params = init_params(k_params, vocab_size, embed_size)

    out = model_embeddings_forward(input_ids, params)
    out = jax.block_until_ready(out)
    assert out.shape == (sent_len, batch, embed_size)
    assert bool(jnp.all(jnp.isfinite(out)))
    print("KERNEL_OK")
</pallas_src>

<mosaic_0001>
module attributes {stable_mosaic.version = 11 : i64} {
  func.func @_fused_cnn_highway_kernel(%arg0: i32, %arg1: memref<8x8x5xi32, #tpu.memory_space<vmem>>, %arg2: memref<150x32xbf16, #tpu.memory_space<vmem>>, %arg3: memref<1x32xf32, #tpu.memory_space<vmem>>, %arg4: memref<32x64xbf16, #tpu.memory_space<vmem>>, %arg5: memref<1x64xf32, #tpu.memory_space<vmem>>, %arg6: memref<8x32xf32, #tpu.memory_space<vmem>>) attributes {dimension_semantics = [#tpu.dimension_semantics<parallel>], iteration_bounds = array<i64: 2>, scalar_prefetch = 0 : i64, scratch_operands = 0 : i64, tpu.core_type = #tpu.core_type<tc>, window_params = [{transform_indices = @transform_0, window_bounds = array<i64: 8, 8, 5>}, {pipeline_mode = #tpu.pipeline_mode<synchronous>, transform_indices = @transform_1, window_bounds = array<i64: 150, 32>}, {pipeline_mode = #tpu.pipeline_mode<synchronous>, transform_indices = @transform_2, window_bounds = array<i64: 1, 32>}, {pipeline_mode = #tpu.pipeline_mode<synchronous>, transform_indices = @transform_3, window_bounds = array<i64: 32, 64>}, {pipeline_mode = #tpu.pipeline_mode<synchronous>, transform_indices = @transform_4, window_bounds = array<i64: 1, 64>}, {transform_indices = @transform_5, window_bounds = array<i64: 8, 32>}]} {
    %c0 = arith.constant 0 : index
    %c0_0 = arith.constant 0 : index
    %c0_1 = arith.constant 0 : index
    %0 = vector.load %arg1[%c0, %c0_0, %c0_1] : memref<8x8x5xi32, #tpu.memory_space<vmem>>, vector<8x8x5xi32>
    %1 = tpu.iota {dimensions = array<i32: 2>} : vector<8x8x150xi32>
    %2 = vector.extract_strided_slice %0 {offsets = [0, 0, 0], sizes = [8, 8, 1], strides = [1, 1, 1]} : vector<8x8x5xi32> to vector<8x8x1xi32>
    %3 = vector.broadcast %2 : vector<8x8x1xi32> to vector<8x8x150xi32>
    %4 = arith.cmpi eq, %1, %3 : vector<8x8x150xi32>
    %5 = vector.extract_strided_slice %0 {offsets = [0, 0, 1], sizes = [8, 8, 1], strides = [1, 1, 1]} : vector<8x8x5xi32> to vector<8x8x1xi32>
    %6 = vector.broadcast %5 : vector<8x8x1xi32> to vector<8x8x150xi32>
    %7 = arith.cmpi eq, %1, %6 : vector<8x8x150xi32>
    %8 = arith.ori %4, %7 : vector<8x8x150xi1>
    %9 = vector.extract_strided_slice %0 {offsets = [0, 0, 2], sizes = [8, 8, 1], strides = [1, 1, 1]} : vector<8x8x5xi32> to vector<8x8x1xi32>
    %10 = vector.broadcast %9 : vector<8x8x1xi32> to vector<8x8x150xi32>
    %11 = arith.cmpi eq, %1, %10 : vector<8x8x150xi32>
    %12 = arith.ori %8, %11 : vector<8x8x150xi1>
    %13 = vector.extract_strided_slice %0 {offsets = [0, 0, 3], sizes = [8, 8, 1], strides = [1, 1, 1]} : vector<8x8x5xi32> to vector<8x8x1xi32>
    %14 = vector.broadcast %13 : vector<8x8x1xi32> to vector<8x8x150xi32>
    %15 = arith.cmpi eq, %1, %14 : vector<8x8x150xi32>
    %16 = arith.ori %12, %15 : vector<8x8x150xi1>
    %17 = vector.extract_strided_slice %0 {offsets = [0, 0, 4], sizes = [8, 8, 1], strides = [1, 1, 1]} : vector<8x8x5xi32> to vector<8x8x1xi32>
    %18 = vector.broadcast %17 : vector<8x8x1xi32> to vector<8x8x150xi32>
    %19 = arith.cmpi eq, %1, %18 : vector<8x8x150xi32>
    %20 = arith.ori %16, %19 : vector<8x8x150xi1>
    %21 = arith.extui %20 : vector<8x8x150xi1> to vector<8x8x150xi32>
    %22 = arith.sitofp %21 : vector<8x8x150xi32> to vector<8x8x150xf32>
    %23 = arith.truncf %22 : vector<8x8x150xf32> to vector<8x8x150xbf16>
    %c0_2 = arith.constant 0 : index
    %c0_3 = arith.constant 0 : index
    %24 = vector.load %arg2[%c0_2, %c0_3] : memref<150x32xbf16, #tpu.memory_space<vmem>>, vector<150x32xbf16>
    "tpu.trace_start"() <{level = 10 : i32, message = "nlj,jd->nld"}> : () -> ()
    %cst = arith.constant dense<0.000000e+00> : vector<8x8x32xf32>
    %25 = tpu.matmul %23, %24, %cst {dimension_numbers = #tpu.dot_dimension_numbers<[2], [0], [0, 1], [1], [0, 0, 0, 1, 1, 1], [], []>} : vector<8x8x150xbf16>, vector<150x32xbf16>, vector<8x8x32xf32> -> vector<8x8x32xf32>
    "tpu.trace_stop"() : () -> ()
    %c0_4 = arith.constant 0 : index
    %c0_5 = arith.constant 0 : index
    %26 = vector.load %arg3[%c0_4, %c0_5] : memref<1x32xf32, #tpu.memory_space<vmem>>, vector<1x32xf32>
    %27 = vector.shape_cast %26 : vector<1x32xf32> to vector<1x1x32xf32>
    %28 = vector.broadcast %27 : vector<1x1x32xf32> to vector<8x8x32xf32>
    %29 = arith.addf %25, %28 : vector<8x8x32xf32>
    %cst_6 = arith.constant 0.000000e+00 : f32
    %30 = vector.broadcast %cst_6 : f32 to vector<8x8x32xf32>
    %31 = arith.maximumf %29, %30 : vector<8x8x32xf32>
    %cst_7 = arith.constant dense<0xFF800000> : vector<8x32xf32>
    %32 = vector.multi_reduction <maximumf>, %31, %cst_7 [1] : vector<8x8x32xf32> to vector<8x32xf32>
    %33 = arith.truncf %32 : vector<8x32xf32> to vector<8x32xbf16>
    %c0_8 = arith.constant 0 : index
    %c0_9 = arith.constant 0 : index
    %34 = vector.load %arg4[%c0_8, %c0_9] : memref<32x64xbf16, #tpu.memory_space<vmem>>, vector<32x64xbf16>
    %cst_10 = arith.constant dense<0.000000e+00> : vector<8x64xf32>
    %35 = tpu.matmul %33, %34, %cst_10 {dimension_numbers = #tpu.dot_dimension_numbers<[1], [0], [0], [1], [0, 0, 1, 1], [], []>} : vector<8x32xbf16>, vector<32x64xbf16>, vector<8x64xf32> -> vector<8x64xf32>
    %c0_11 = arith.constant 0 : index
    %c0_12 = arith.constant 0 : index
    %36 = vector.load %arg5[%c0_11, %c0_12] : memref<1x64xf32, #tpu.memory_space<vmem>>, vector<1x64xf32>
    %37 = vector.broadcast %36 : vector<1x64xf32> to vector<8x64xf32>
    %38 = arith.addf %35, %37 : vector<8x64xf32>
    %39 = vector.extract_strided_slice %38 {offsets = [0, 0], sizes = [8, 32], strides = [1, 1]} : vector<8x64xf32> to vector<8x32xf32>
    %cst_13 = arith.constant 0.000000e+00 : f32
    %40 = vector.broadcast %cst_13 : f32 to vector<8x32xf32>
    %41 = arith.maximumf %39, %40 : vector<8x32xf32>
    %42 = vector.extract_strided_slice %38 {offsets = [0, 32], sizes = [8, 32], strides = [1, 1]} : vector<8x64xf32> to vector<8x32xf32>
    %43 = arith.negf %42 : vector<8x32xf32>
    %44 = math.exp %43 : vector<8x32xf32>
    %cst_14 = arith.constant 1.000000e+00 : f32
    %45 = vector.broadcast %cst_14 : f32 to vector<8x32xf32>
    %46 = arith.addf %45, %44 : vector<8x32xf32>
    %47 = arith.divf %45, %46 : vector<8x32xf32>
    %48 = arith.mulf %47, %41 : vector<8x32xf32>
    %cst_15 = arith.constant 1.000000e+00 : f32
    %49 = vector.broadcast %cst_15 : f32 to vector<8x32xf32>
    %50 = arith.subf %49, %47 : vector<8x32xf32>
    %51 = arith.mulf %50, %32 : vector<8x32xf32>
    %52 = arith.addf %48, %51 : vector<8x32xf32>
    %c0_16 = arith.constant 0 : index
    %c0_17 = arith.constant 0 : index
    %53 = vector.load %arg6[%c0_16, %c0_17] : memref<8x32xf32, #tpu.memory_space<vmem>>, vector<8x32xf32>
    tpu.vector_store %arg6[%c0_16, %c0_17], %52 {strides = array<i32>} : memref<8x32xf32, #tpu.memory_space<vmem>>, vector<8x32xf32>,
    return
  }
  func.func @transform_0(%arg0: i32) -> (i32, i32, i32) {
    %c0_i32 = arith.constant 0 : i32
    %c0_i32_0 = arith.constant 0 : i32
    %c0_i32_1 = arith.constant 0 : i32
    return %arg0, %c0_i32, %c0_i32_0 : i32, i32, i32
  }
  func.func @transform_1(%arg0: i32) -> (i32, i32) {
    %c0_i32 = arith.constant 0 : i32
    %c0_i32_0 = arith.constant 0 : i32
    %c0_i32_1 = arith.constant 0 : i32
    return %c0_i32, %c0_i32_0 : i32, i32
  }
  func.func @transform_2(%arg0: i32) -> (i32, i32) {
    %c0_i32 = arith.constant 0 : i32
    %c0_i32_0 = arith.constant 0 : i32
    %c0_i32_1 = arith.constant 0 : i32
    return %c0_i32, %c0_i32_0 : i32, i32
  }
  func.func @transform_3(%arg0: i32) -> (i32, i32) {
    %c0_i32 = arith.constant 0 : i32
    %c0_i32_0 = arith.constant 0 : i32
    %c0_i32_1 = arith.constant 0 : i32
    return %c0_i32, %c0_i32_0 : i32, i32
  }
  func.func @transform_4(%arg0: i32) -> (i32, i32) {
    %c0_i32 = arith.constant 0 : i32
    %c0_i32_0 = arith.constant 0 : i32
    %c0_i32_1 = arith.constant 0 : i32
    return %c0_i32, %c0_i32_0 : i32, i32
  }
  func.func @transform_5(%arg0: i32) -> (i32, i32) {
    %c0_i32 = arith.constant 0 : i32
    %c0_i32_0 = arith.constant 0 : i32
    return %arg0, %c0_i32 : i32, i32
  }
}

</mosaic_0001>

<bundles_post_ra>
// kernel: tpu_custom_call.1
= control target key start
LH: loop header
LB: loop body
LE: loop exit
PB: predicated region body
PF: predicated region fallthrough
CT: control target
= control target key end

     0   :  { %10 = vsyncpa [#allocation3], 0  ;;  %s1753_s0 = inlined_call_operand.vmem [shape: s32[16,8,5], index: 0, kind: input, shape index: {}]   ;;  %s1754_s1 = inlined_call_operand.vmem [shape: bf16[150,32], index: 1, kind: input, shape index: {}]   ;;  %s1755_s2 = inlined_call_operand.vmem [shape: f32[1,32], index: 2, kind: input, shape index: {}]   ;;  %s1756_s3 = inlined_call_operand.vmem [shape: bf16[32,64], index: 3, kind: input, shape index: {}]   ;;  %s1757_s4 = inlined_call_operand.vmem [shape: f32[1,64], index: 4, kind: input, shape index: {}]   ;;  %s1758_s5 = inlined_call_operand.hbm [shape: f32[16,32], index: 5, kind: output, shape index: {}]  }
   0x1   :  { %12 = vsyncpa [#allocation3 + $0x1], 0  ;;  %s1327_s18 = smov 0   ;;  %s1329_s19 = smov 0  }
   0x2   :  { %s1331_s20 = smov 0   ;;  %s1333_s21 = smov 0  }
   0x3 LB: > { %s1348_s22 = sadd.s32 4294967295, %s1285_s21   ;;  %s1039_s23 = sadd.s32 4294967294, %s1285_s21   ;;  %s1285_s21 = sphi %s1333_s21, %s1796_s21   ;;  %s1281_s20 = sphi %s1331_s20, %s1795_s20   ;;  %s1277_s19 = sphi %s1329_s19, %s1794_s19   ;;  %s1273_s18 = sphi %s1327_s18, %s1793_s18  }
   0x4   : > { %s1352_s24 = sadd.s32 1, %s1285_s21   ;;  %s135_s25 = sadd.s32 1, %s1281_s20 }
   0x5   : > { %s132_s26 = ssub.s32 %s1285_s21, %s1352_s24  ;;  %p145_p0 = scmp.ne.s32.totalorder %s1281_s20, %s1277_s19 }
   0x6   : > { %p133_p1 = scmp.eq.s32.totalorder %s132_s26, 0  ;;  %p146_p2 = scmp.eq.s32.totalorder %s1348_s22, 1 }
   0x7   : > { %p151_p3 = scmp.ne.s32.totalorder %s1277_s19, %s1273_s18  ;;  %p152_p4 = scmp.eq.s32.totalorder %s1039_s23, 1 }
   0x8   : > { %s1363_s27 = scalar_select %p133_p1, %s1281_s20, %s135_s25  }
   0x9   : > { %p1365_p5 = por %p146_p2, %p145_p0  ;;  %p1369_p6 = por %p152_p4, %p151_p3 }
   0xa   : > { %p1042_p7 = scmp.ge.s32.totalorder %s1285_s21, 1  ;;  %p191_p8 = scmp.lt.s32.totalorder %s1285_s21, 3 }
   0xc   : > { %p192_p9 = pnand %p1042_p7, %p191_p8 }
   0xd   : > { %s1044_s30 = sshll.u32 (!%p192_p9), %s1348_s22, 3  ;;  %v1207_v0 = vld [vmem:[%s1754_s1] sm:$0xff] (!%p192_p9)   ;;  %v1287_v1 = vmov (!%p192_p9), 1   ;;  %v1288_v2 = vmov (!%p192_p9), 0   ;;  %v1208_v3 = vld [vmem:[%s1754_s1 + $0x8] sm:$0xff] (!%p192_p9)   ;;  %v1209_v5 = vld [vmem:[%s1754_s1 + $0x10] sm:$0xff] (!%p192_p9)   ;;  %v234_v27 = vlaneseq (!%p192_p9) }
   0xe   : > { %195 = sbr.rel (%p192_p9) target bundleno = 980 (0x3d4), region = 40  ;;  %1182 = vset.pattern.permute.xlu1 (!%p192_p9), %v1287_v1  ;;  %1181 = vset.pattern.permute.xlu0 (!%p192_p9), %v1288_v2  ;;  %p220_p10 = scmp.lt.s32.totalorder (!%p192_p9), %s1044_s30, 15  ;;  %v1210_v7 = vld [vmem:[%s1754_s1 + $0x18] sm:$0xff] (!%p192_p9)   ;;  %v1211_v9 = vld [vmem:[%s1754_s1 + $0x20] sm:$0xff] (!%p192_p9)   ;;  %v1289_v10 = vmov (!%p192_p9), 2   ;;  %v1212_v11 = vld [vmem:[%s1754_s1 + $0x28] sm:$0xff] (!%p192_p9)  }
   0xf   : > { %693 = vmatprep.subr.bf16.mxu0 (!%p192_p9), %v1288_v2  ;;  %1113 = vmatprep.subr.bf16.mxu1 (!%p192_p9), %v1288_v2  ;;  %v1290_v12 = vmov (!%p192_p9), 3   ;;  %v1213_v13 = vld [vmem:[%s1754_s1 + $0x30] sm:$0xff] (!%p192_p9)   ;;  %v1291_v14 = vmov (!%p192_p9), 4   ;;  %v1214_v15 = vld [vmem:[%s1754_s1 + $0x38] sm:$0xff] (!%p192_p9)   ;;  %v1215_v18 = vld [vmem:[%s1754_s1 + $0x40] sm:$0xff] (!%p192_p9)   ;;  %vm689_vm0 = vcmask (!%p192_p9), 1042432  }
  0x10   : > { %694 = vmatpush1.bf16.msra.mxu0 (!%p192_p9), %v1207_v0  ;;  %1123 = vmatpush1.bf16.msra.mxu1 (!%p192_p9), %v1207_v0  ;;  %v1216_v19 = vld [vmem:[%s1754_s1 + $0x48] ss:$0 sps:$4 sm:$0x77] (!%p192_p9)   ;;  %v1292_v22 = vmov (!%p192_p9), 0.0   ;;  %v1473_v30 = vand.u32 (!%p192_p9), 127, %v234_v27  ;;  %v1762_v36 = vmov (!%p192_p9), 0 }
  0x11   : > { %695 = vmatprep.subr.bf16.mxu0 (!%p192_p9), %v1288_v2  ;;  %1114 = vmatprep.subr.bf16.mxu1 (!%p192_p9), %v1288_v2  ;;  %v691_v20 = vsel (!%p192_p9), %vm689_vm0, %v1216_v19, 0  ;;  %v1771_v56 = vmov (!%p192_p9), 0  ;;  %v1775_v61 = vmov (!%p192_p9), 0  ;;  %v1679_v42 = vld [vmem:[%s1755_s2] ss:$0 sm:$0xff] (!%p192_p9)  ;;  %s1294_s26 = smov (!%p192_p9), 32  }
  0x12   : > { %v1478_v33 = vadd.s32 (!%p192_p9), 128, %v1473_v30  ;;  %s1295_s7 = smov (!%p192_p9), 96   ;;  %s216_s8 = sand.u32 (!%p192_p9), 1, %s1277_s19  }
  0x13   : > { %s1043_s9 = sshll.u32 (!%p192_p9), %s216_s8, 3  ;;  %s967_s16 = scalar_lea.sflag (!%p192_p9), [#allocation3], %s216_s8 }
  0x14   : > { %696 = vmatpush1.bf16.msra.mxu0 (!%p192_p9), %v1208_v3  ;;  %1124 = vmatpush1.bf16.msra.mxu1 (!%p192_p9), %v1208_v3  ;;  %s218_s11 = scalar_lea.vmem (!%p192_p9), [#allocation2], %s1043_s9 }
  0x15   : > { %s1798_s30 = smov (!%p220_p10, %s1044_s30), 15  ;;  %697 = vmatprep.subr.bf16.mxu0 %v1288_v2  ;;  %1115 = vmatprep.subr.bf16.mxu1 %v1288_v2  ;;  %s980_s12 = sshll.u32 %s218_s11, 4  ;;  %s1712_s12 = int_to_ptr.vmem [resolvable:$true] %s980_s12 }
  0x16   : > { %s1045_s10 = sshll.u32 %s1798_s30, 3  ;;  %s1223_s17 = scalar_lea.vmem %s1712_s12, 128 }
  0x17   : > { %s1391_s13 = scalar_lea.vmem %s1753_s0, %s1045_s10  ;;  %s1091_s10 = sshll.u32 %s1348_s22, 7 }
  0x18   : > { %v226_v4 = vld [vmem:[%s1391_s13] sm:$0xff]  ;;  %v227_v6 = vld [vmem:[%s1391_s13 + $0x8] sm:$0xff]  ;;  %698 = vmatpush1.bf16.msra.mxu0 %v1209_v5  ;;  %1125 = vmatpush1.bf16.msra.mxu1 %v1209_v5  ;;  %v1404_v8 = vld [vmem:[%s1391_s13 + $0x10] sm:$0xff]  ;;  %s1710_s15 = scalar_lea.hbm %s1758_s5, %s1091_s10  ;;  %p1224_p11 = scmp.ne.s32.totalorder %s1712_s12, %s1223_s17 }
  0x19   : > { %278 = vperm.xlu1 %1182, %v226_v4   ;;  %238 = vperm.xlu0 %1181, %v226_v4   ;;  %v231_v16 = vld [vmem:[%s1391_s13 + $0x28] sm:$0xff]  ;;  %v229_v17 = vld [vmem:[%s1391_s13 + $0x18] sm:$0xff]  ;;  %v230_v21 = vld [vmem:[%s1391_s13 + $0x20] sm:$0xff]  ;;  %s1296_s22 = smov [#allocation2]  }
  0x1a   : > { %699 = vmatprep.subr.bf16.mxu0 %v1288_v2  ;;  %1116 = vmatprep.subr.bf16.mxu1 %v1288_v2  ;;  %v232_v23 = vld [vmem:[%s1391_s13 + $0x30] sm:$0xff]  ;;  %v233_v24 = vld [vmem:[%s1391_s13 + $0x38] sm:$0xff]  ;;  %p1225_p12 = pnand %p1224_p11, %p1365_p5  ;;  %s1227_s23 = sshll.u32 %s1296_s22, 4  ;;  %s1228_s23 = int_to_ptr.vmem [resolvable:$false] %s1227_s23 }
  0x1b   : > { %s1229_s25 = scalar_lea.vmem %s1228_s23, 256  ;;  %p1230_p0 = scmp.lt.s32.totalorder %s1712_s12, %s1228_s23 }
  0x1c   : > { %700 = vmatpush1.bf16.msra.mxu0 %v1210_v7  ;;  %1126 = vmatpush1.bf16.msra.mxu1 %v1210_v7  ;;  %p1226_p13 = pneg %p1225_p12  ;;  %p1231_p1 = scmp.lt.s32.totalorder %s1229_s25, %s1223_s17 }
  0x1d   : > { %281 = vperm.xlu1 %1182, %v227_v6   ;;  %241 = vperm.xlu0 %1181, %v227_v6  }
  0x1e   : > { %701 = vmatprep.subr.bf16.mxu0 %v1288_v2  ;;  %1117 = vmatprep.subr.bf16.mxu1 %v1288_v2  ;;  %p1232_p2 = por %p1231_p1, %p1230_p0 }
  0x20   : > { %702 = vmatpush1.bf16.msra.mxu0 %v1211_v9  ;;  %1127 = vmatpush1.bf16.msra.mxu1 %v1211_v9  ;;  %p1233_p3 = pnand %p1232_p2, %p1226_p13 }
  0x21   : > { %1183 = vset.pattern.permute.xlu1 %v1289_v10  ;;  %244 = vperm.xlu0 %1181, %v1404_v8  }
  0x22   : > { %337 = vperm.xlu1 %1183, %v227_v6   ;;  %703 = vmatprep.subr.bf16.mxu0 %v1288_v2 }
  0x23   : > { %1118 = vmatprep.subr.bf16.mxu1 %v1288_v2 }
  0x24   : > { %704 = vmatpush1.bf16.msra.mxu0 %v1212_v11  ;;  %1128 = vmatpush1.bf16.msra.mxu1 %v1212_v11 }
  0x25   : > { %1186 = vset.pattern.permute.xlu0 %v1290_v12  ;;  %705 = vmatprep.subr.bf16.mxu0 %v1288_v2 }
  0x26   : > { %1184 = vset.pattern.permute.xlu1 %v1290_v12  ;;  %393 = vperm.xlu0 %1186, %v227_v6  }
  0x27   : > { %390 = vperm.xlu1 %1184, %v226_v4   ;;  %1119 = vmatprep.subr.bf16.mxu1 %v1288_v2 }
  0x28   : > { %706 = vmatpush1.bf16.msra.mxu0 %v1213_v13  ;;  %1129 = vmatpush1.bf16.msra.mxu1 %v1213_v13 }
  0x29   : > { %707 = vmatprep.subr.bf16.mxu0 %v1288_v2  ;;  %1120 = vmatprep.subr.bf16.mxu1 %v1288_v2 }
  0x2a   : > { %396 = vperm.xlu0 %1186, %v1404_v8  }
  0x2b   : > { %1185 = vset.pattern.permute.xlu1 %v1291_v14 }
  0x2c   : > { %446 = vperm.xlu1 %1185, %v226_v4   ;;  %708 = vmatpush1.bf16.msra.mxu0 %v1214_v15 }
  0x2d   : > { %709 = vmatprep.subr.bf16.mxu0 %v1288_v2  ;;  %1130 = vmatpush1.bf16.msra.mxu1 %v1214_v15 }
  0x2e   : > { %1190 = vset.pattern.permute.xlu0 %v1289_v10  ;;  %1121 = vmatprep.subr.bf16.mxu1 %v1288_v2 }
  0x2f   : > { %334 = vperm.xlu0 %1190, %v226_v4  }
  0x30   : > { %449 = vperm.xlu1 %1185, %v227_v6   ;;  %710 = vmatpush1.bf16.msra.mxu0 %v1215_v18 }
  0x31   : > { %711 = vmatprep.subr.bf16.mxu0 %v1288_v2  ;;  %1131 = vmatpush1.bf16.msra.mxu1 %v1215_v18  ;;  %v1782_v18 = vmov 0 }
  0x32   : > { %1122 = vmatprep.subr.bf16.mxu1 %v1288_v2 }
  0x33   : > { %349 = vperm.xlu0 %1190, %v231_v16  }
  0x34   : > { %1187 = vset.pattern.permute.xlu1 %v1288_v2  ;;  %712 = vmatpush1.bf16.msra.mxu0 %v691_v20 }
  0x35   : > { %247 = vperm.xlu1 %1187, %v229_v17   ;;  %1132 = vmatpush1.bf16.msra.mxu1 %v691_v20 }
  0x36   : > { %1105 = vmatprep.subr.bf16.mxu1 %v1292_v22 }
  0x37   : > { %1196 = vset.pattern.permute.xlu0 %v1287_v1 }
  0x38   : > { %287 = vperm.xlu0 %1196, %v229_v17  }
  0x39   : > { %1188 = vset.pattern.permute.xlu1 %v1287_v1 }
  0x3a   : > { %284 = vperm.xlu1 %1188, %v1404_v8  }
  0x3c   : > { %290 = vperm.xlu0 %1196, %v230_v21  }
  0x3e   : > { %1189 = vset.pattern.permute.xlu1 %v1289_v10 }
  0x3f   : > { %340 = vperm.xlu1 %1189, %v1404_v8  }
  0x40   : > { %296 = vperm.xlu0 %1196, %v232_v23  }
  0x43   : > { %343 = vperm.xlu1 %1189, %v229_v17  }
  0x44   : > { %1198 = vset.pattern.permute.xlu0 %v1291_v14 }
  0x45   : > { %455 = vperm.xlu0 %1198, %v229_v17  }
  0x47   : > { %1191 = vset.pattern.permute.xlu1 %v1290_v12 }
  0x48   : > { %399 = vperm.xlu1 %1191, %v229_v17   ;;  %v1780_v17 = vmov 0 }
  0x49   : > { %458 = vperm.xlu0 %1198, %v230_v21  }
  0x4c   : > { %1192 = vset.pattern.permute.xlu1 %v1291_v14 }
  0x4d   : > { %452 = vperm.xlu1 %1192, %v1404_v8   ;;  %1202 = vset.pattern.permute.xlu0 %v1290_v12 }
  0x4e   : > { %405 = vperm.xlu0 %1202, %v231_v16  }
  0x51   : > { %1193 = vset.pattern.permute.xlu1 %v1288_v2 }
  0x52   : > { %250 = vperm.xlu1 %1193, %v230_v21   ;;  %411 = vperm.xlu0 %1202, %v233_v24  }
  0x56   : > { %253 = vperm.xlu1 %1193, %v231_v16   ;;  %1206 = vset.pattern.permute.xlu0 %v1291_v14 }
  0x5a   : > { %1194 = vset.pattern.permute.xlu1 %v1287_v1 }
  0x5b   : > { %293 = vperm.xlu1 %1194, %v231_v16  }
  0x5f   : > { %1195 = vset.pattern.permute.xlu1 %v1289_v10 }
  0x60   : > { %346 = vperm.xlu1 %1195, %v230_v21  }
  0x64   : > { %1197 = vset.pattern.permute.xlu1 %v1288_v2 }
  0x65   : > { %256 = vperm.xlu1 %1197, %v232_v23  }
  0x69   : > { %259 = vperm.xlu1 %1197, %v233_v24  }
  0x6d   : > { %1199 = vset.pattern.permute.xlu1 %v1287_v1 }
  0x6e   : > { %299 = vperm.xlu1 %1199, %v233_v24  }
  0x72   : > { %1200 = vset.pattern.permute.xlu1 %v1290_v12 }
  0x73   : > { %402 = vperm.xlu1 %1200, %v230_v21   ;;  %v1786_v21 = vmov 0 }
  0x77   : > { %1201 = vset.pattern.permute.xlu1 %v1289_v10 }
  0x78   : > { %352 = vperm.xlu1 %1201, %v232_v23  }
  0x7c   : > { %355 = vperm.xlu1 %1201, %v233_v24  }
  0x80   : > { %1203 = vset.pattern.permute.xlu1 %v1291_v14 }
  0x81   : > { %461 = vperm.xlu1 %1203, %v231_v16  }
  0x85   : > { %1204 = vset.pattern.permute.xlu1 %v1290_v12 }
  0x86   : > { %408 = vperm.xlu1 %1204, %v232_v23  }
  0x8a   : > { %1205 = vset.pattern.permute.xlu1 %v1291_v14 }
  0x8b   : > { %464 = vperm.xlu1 %1205, %v232_v23  }
  0x8f   : > { %467 = vperm.xlu1 %1205, %v233_v24  }
  0x98   : > { %v279_v25 = vpop.permute.xlu1 %278  ;;  %v239_v26 = vpop.permute.xlu0 %238 }
  0x99   : > { %vm301_vm1 = vcmp.eq.s32.totalorder %v1473_v30, %v279_v25  ;;  %vm261_vm2 = vcmp.eq.s32.totalorder %v1473_v30, %v239_v26  ;;  %vm302_vm3 = vcmp.eq.s32.totalorder %v1478_v33, %v279_v25  ;;  %vm262_vm4 = vcmp.eq.s32.totalorder %v1478_v33, %v239_v26 }
  0x9a   : > { %vm1486_vm7 = vmor %vm261_vm2, %vm301_vm1 }
  0x9b   : > { %v1763_v36 = vsel %vm1486_vm7, 4294967295, %v1762_v36  ;;  %vm1492_vm10 = vmor %vm262_vm4, %vm302_vm3 }
  0x9c   : > { %v282_v28 = vpop.permute.xlu1 %281  ;;  %v242_v29 = vpop.permute.xlu0 %241 }
  0x9d   : > { %vm303_vm5 = vcmp.eq.s32.totalorder %v1473_v30, %v282_v28  ;;  %vm263_vm6 = vcmp.eq.s32.totalorder %v1473_v30, %v242_v29  ;;  %vm304_vm8 = vcmp.eq.s32.totalorder %v1478_v33, %v282_v28  ;;  %vm264_vm9 = vcmp.eq.s32.totalorder %v1478_v33, %v242_v29 }
  0x9e   : > { %vm319_vm12 = vmor %vm263_vm6, %vm303_vm5  ;;  %vm1770_vm6 = vnez %v1763_v36 }
  0x9f   : > { %vm320_vm14 = vmor %vm264_vm9, %vm304_vm8 }
  0xa0   : > { %v1475_v31 = vpop.permute.xlu0 %244 }
  0xa1   : > { %v338_v32 = vpop.permute.xlu1 %337 }
  0xa2   : > { %vm359_vm11 = vcmp.eq.s32.totalorder %v1473_v30, %v338_v32  ;;  %vm360_vm13 = vcmp.eq.s32.totalorder %v1478_v33, %v338_v32 }
  0xa3   : > { %vm375_vm0 = vmor %vm319_vm12, %vm359_vm11 }
  0xa4   : > { %vm376_vm2 = vmor %vm320_vm14, %vm360_vm13 }
  0xa5   : > { %v394_v34 = vpop.permute.xlu0 %393 }
  0xa6   : > { %v391_v35 = vpop.permute.xlu1 %390  ;;  %vm415_vm15 = vcmp.eq.s32.totalorder %v1473_v30, %v394_v34  ;;  %vm416_vm1 = vcmp.eq.s32.totalorder %v1478_v33, %v394_v34 }
  0xa7   : > { %vm1502_vm7 = vmor %vm375_vm0, %vm415_vm15  ;;  %vm413_vm9 = vcmp.eq.s32.totalorder %v1473_v30, %v391_v35  ;;  %vm414_vm12 = vcmp.eq.s32.totalorder %v1478_v33, %v391_v35 }
  0xa8   : > { %vm1506_vm3 = vmor %vm376_vm2, %vm416_vm1 }
  0xa9   : > { %v1497_v38 = vpop.permute.xlu0 %396 }
  0xab   : > { %v447_v39 = vpop.permute.xlu1 %446 }
  0xac   : > { %vm469_vm15 = vcmp.eq.s32.totalorder %v1473_v30, %v447_v39 }
  0xae   : > { %v335_v41 = vpop.permute.xlu0 %334 }
  0xaf   : > { %vm357_vm4 = vcmp.eq.s32.totalorder %v1473_v30, %v335_v41  ;;  %vm358_vm5 = vcmp.eq.s32.totalorder %v1478_v33, %v335_v41  ;;  %v450_v43 = vpop.permute.xlu1 %449 }
  0xb0   : > { %vm373_vm8 = vmor %vm1770_vm6, %vm357_vm4  ;;  %vm471_vm14 = vcmp.eq.s32.totalorder %v1473_v30, %v450_v43  ;;  %vm472_vm1 = vcmp.eq.s32.totalorder %v1478_v33, %v450_v43 }
  0xb1   : > { %vm374_vm11 = vmor %vm1492_vm10, %vm358_vm5  ;;  %vm470_vm10 = vcmp.eq.s32.totalorder %v1478_v33, %v447_v39 }
  0xb2   : > { %vm429_vm13 = vmor %vm373_vm8, %vm413_vm9  ;;  %v1519_v44 = vpop.permute.xlu0 %349  ;;  %vm1759_vm8 = vcmask 179200   ;;  %vm265_vm9 = vcmp.eq.s32.totalorder %v1473_v30, %v1475_v31 }
  0xb3   : > { %vm430_vm0 = vmor %vm374_vm11, %vm414_vm12 }
  0xb4   : > { %vm485_vm2 = vmor %vm429_vm13, %vm469_vm15  ;;  %v248_v45 = vpop.permute.xlu1 %247 }
  0xb5   : > { %vm487_vm4 = vmor %vm1502_vm7, %vm471_vm14  ;;  %v1046_v46 = vsel %vm485_vm2, 1.0, %v1292_v22  ;;  %vm267_vm11 = vcmp.eq.s32.totalorder %v1473_v30, %v248_v45  ;;  %vm268_vm13 = vcmp.eq.s32.totalorder %v1478_v33, %v248_v45 }
  0xb6   : > { %vm488_vm5 = vmor %vm1506_vm3, %vm472_vm1  ;;  %v1048_v47 = vsel %vm487_vm4, 1.0, %v1292_v22 }
  0xb7   : > { %vm486_vm6 = vmor %vm430_vm0, %vm470_vm10  ;;  %v1049_v48 = vsel %vm488_vm5, 1.0, %v1292_v22  ;;  %v288_v49 = vpop.permute.xlu0 %287  ;;  %v1094_v51 = vpack.c.bf16 %v1048_v47, %v1046_v46  ;;  %vm266_vm0 = vcmp.eq.s32.totalorder %v1478_v33, %v1475_v31  ;;  %vm417_vm5 = vcmp.eq.s32.totalorder %v1473_v30, %v1497_v38 }
  0xb8   : > { %v1047_v50 = vsel %vm486_vm6, 1.0, %v1292_v22  ;;  %vm307_vm7 = vcmp.eq.s32.totalorder %v1473_v30, %v288_v49  ;;  %vm308_vm3 = vcmp.eq.s32.totalorder %v1478_v33, %v288_v49 }
  0xb9   : > { %v1095_v52 = vpack.c.bf16 %v1049_v48, %v1047_v50  ;;  %v285_v53 = vpop.permute.xlu1 %284  ;;  %vm1542_vm14 = vmor %vm267_vm11, %vm307_vm7 }
  0xba   : > { %vm305_vm12 = vcmp.eq.s32.totalorder %v1473_v30, %v285_v53  ;;  %v1772_v56 = vsel %vm1542_vm14, 4294967295, %v1771_v56  ;;  %vm1551_vm1 = vmor %vm268_vm13, %vm308_vm3  ;;  %vm306_vm2 = vcmp.eq.s32.totalorder %v1478_v33, %v285_v53  ;;  %vm418_vm13 = vcmp.eq.s32.totalorder %v1478_v33, %v1497_v38 }
  0xbb   : > { %1081 = vmatprep.mubr.msk.bf16.mxu0 %vm1759_vm8, %v1095_v52  ;;  %v1533_v54 = vpop.permute.xlu0 %290  ;;  %vm321_vm4 = vmor %vm265_vm9, %vm305_vm12  ;;  %vm1777_vm9 = vnez %v1772_v56 }
  0xbc   : > { %726 = vmatmul.mubr.bf16.vlgmr.msra.gmra.mrb[0].mxu0 %v1094_v51  ;;  %vm322_vm7 = vmor %vm266_vm0, %vm306_vm2 }
  0xbe   : > { %v341_v55 = vpop.permute.xlu1 %340 }
  0xbf   : > { %vm361_vm15 = vcmp.eq.s32.totalorder %v1473_v30, %v341_v55  ;;  %v1547_v57 = vpop.permute.xlu0 %296  ;;  %vm362_vm10 = vcmp.eq.s32.totalorder %v1478_v33, %v341_v55 }
  0xc0   : > { %vm377_vm6 = vmor %vm321_vm4, %vm361_vm15 }
  0xc1   : > { %vm378_vm8 = vmor %vm322_vm7, %vm362_vm10 }
  0xc2   : > { %v344_v59 = vpop.permute.xlu1 %343  ;;  %vm1561_vm3 = vmor %vm377_vm6, %vm417_vm5 }
  0xc3   : > { %vm363_vm11 = vcmp.eq.s32.totalorder %v1473_v30, %v344_v59  ;;  %vm364_vm14 = vcmp.eq.s32.totalorder %v1478_v33, %v344_v59  ;;  %v1776_v61 = vsel %vm1561_vm3, 4294967295, %v1775_v61  ;;  %vm434_vm7 = vmor %vm378_vm8, %vm418_vm13  ;;  %vm1779_vm8 = vcmask 179200  }
  0xc4   : > { %v456_v60 = vpop.permute.xlu0 %455  ;;  %vm379_vm12 = vmor %vm1777_vm9, %vm363_vm11 }
  0xc5   : > { %vm380_vm15 = vmor %vm1551_vm1, %vm364_vm14  ;;  %vm475_vm10 = vcmp.eq.s32.totalorder %v1473_v30, %v456_v60  ;;  %vm476_vm6 = vcmp.eq.s32.totalorder %v1478_v33, %v456_v60  ;;  %vm1778_vm14 = vnez %v1776_v61 }
  0xc7   : > { %v400_v62 = vpop.permute.xlu1 %399 }
  0xc8   : > { %vm419_vm0 = vcmp.eq.s32.totalorder %v1473_v30, %v400_v62  ;;  %vm420_vm2 = vcmp.eq.s32.totalorder %v1478_v33, %v400_v62  ;;  %v459_v12 = vpop.permute.xlu0 %458 }
  0xc9   : > { %vm435_vm4 = vmor %vm379_vm12, %vm419_vm0 }
  0xca   : > { %vm436_vm5 = vmor %vm380_vm15, %vm420_vm2  ;;  %vm309_vm15 = vcmp.eq.s32.totalorder %v1473_v30, %v1533_v54 }
  0xcb   : > { %vm491_vm3 = vmor %vm435_vm4, %vm475_vm10  ;;  %vm367_vm10 = vcmp.eq.s32.totalorder %v1473_v30, %v1519_v44 }
  0xcc   : > { %v453_v63 = vpop.permute.xlu1 %452  ;;  %vm492_vm11 = vmor %vm436_vm5, %vm476_vm6  ;;  %v1052_v0 = vsel %vm491_vm3, 1.0, %v1292_v22 }
  0xcd   : > { %vm473_vm9 = vcmp.eq.s32.totalorder %v1473_v30, %v453_v63  ;;  %vm474_vm1 = vcmp.eq.s32.totalorder %v1478_v33, %v453_v63  ;;  %v1053_v2 = vsel %vm492_vm11, 1.0, %v1292_v22  ;;  %v406_v15 = vpop.permute.xlu0 %405 }
  0xce   : > { %vm489_vm0 = vmor %vm1778_vm14, %vm473_vm9  ;;  %vm310_vm9 = vcmp.eq.s32.totalorder %v1478_v33, %v1533_v54 }
  0xcf   : > { %vm490_vm12 = vmor %vm434_vm7, %vm474_vm1  ;;  %v1050_v1 = vsel %vm489_vm0, 1.0, %v1292_v22  ;;  %vm368_vm7 = vcmp.eq.s32.totalorder %v1478_v33, %v1519_v44 }
  0xd0   : > { %v1051_v3 = vsel %vm490_vm12, 1.0, %v1292_v22  ;;  %v1096_v4 = vpack.c.bf16 %v1052_v0, %v1050_v1  ;;  %vm423_vm12 = vcmp.eq.s32.totalorder %v1473_v30, %v406_v15 }
  0xd1   : > { %v1097_v5 = vpack.c.bf16 %v1053_v2, %v1051_v3  ;;  %v251_v6 = vpop.permute.xlu1 %250  ;;  %v412_v27 = vpop.permute.xlu0 %411 }
  0xd2   : > { %vm269_vm2 = vcmp.eq.s32.totalorder %v1473_v30, %v251_v6  ;;  %vm270_vm1 = vcmp.eq.s32.totalorder %v1478_v33, %v251_v6 }
  0xd3   : > { %1082 = vmatprep.mubr.msk.bf16.mxu0 %vm1779_vm8, %v1097_v5  ;;  %vm325_vm14 = vmor %vm269_vm2, %vm309_vm15 }
  0xd4   : > { %734 = vmatmul.mubr.bf16.gmra.mrb[4].mxu0 %v1096_v4 }
  0xd5   : > { %v254_v7 = vpop.permute.xlu1 %253 }
  0xd6   : > { %vm271_vm4 = vcmp.eq.s32.totalorder %v1473_v30, %v254_v7  ;;  %vm272_vm5 = vcmp.eq.s32.totalorder %v1478_v33, %v254_v7 }
  0xda   : > { %v294_v8 = vpop.permute.xlu1 %293 }
  0xdb   : > { %vm311_vm3 = vcmp.eq.s32.totalorder %v1473_v30, %v294_v8  ;;  %vm312_vm13 = vcmp.eq.s32.totalorder %v1478_v33, %v294_v8 }
  0xdc   : > { %vm327_vm6 = vmor %vm271_vm4, %vm311_vm3  ;;  %vm424_vm3 = vcmp.eq.s32.totalorder %v1478_v33, %v406_v15 }
  0xdd   : > { %vm328_vm11 = vmor %vm272_vm5, %vm312_vm13 }
  0xde   : > { %vm383_vm0 = vmor %vm327_vm6, %vm367_vm10 }
  0xdf   : > { %v347_v9 = vpop.permute.xlu1 %346  ;;  %vm384_vm8 = vmor %vm328_vm11, %vm368_vm7  ;;  %vm313_vm11 = vcmp.eq.s32.totalorder %v1473_v30, %v1547_v57 }
  0xe0   : > { %vm326_vm4 = vmor %vm270_vm1, %vm310_vm9  ;;  %vm365_vm5 = vcmp.eq.s32.totalorder %v1473_v30, %v347_v9  ;;  %vm366_vm2 = vcmp.eq.s32.totalorder %v1478_v33, %v347_v9 }
  0xe1   : > { %vm1603_vm13 = vmor %vm383_vm0, %vm423_vm12  ;;  %vm314_vm0 = vcmp.eq.s32.totalorder %v1478_v33, %v1547_v57  ;;  %vm477_vm12 = vcmp.eq.s32.totalorder %v1473_v30, %v459_v12 }
  0xe2   : > { %v1781_v17 = vsel %vm1603_vm13, 4294967295, %v1780_v17  ;;  %vm1608_vm15 = vmor %vm384_vm8, %vm424_vm3 }
  0xe3   : > { %v1783_v18 = vsel %vm1608_vm15, 4294967295, %v1782_v18  ;;  %vm381_vm6 = vmor %vm325_vm14, %vm365_vm5  ;;  %vm478_vm15 = vcmp.eq.s32.totalorder %v1478_v33, %v459_v12 }
  0xe4   : > { %v257_v10 = vpop.permute.xlu1 %256  ;;  %vm382_vm9 = vmor %vm326_vm4, %vm366_vm2 }
  0xe5   : > { %vm273_vm1 = vcmp.eq.s32.totalorder %v1473_v30, %v257_v10  ;;  %vm274_vm8 = vcmp.eq.s32.totalorder %v1478_v33, %v257_v10 }
  0xe6   : > { %vm1622_vm5 = vmor %vm273_vm1, %vm313_vm11  ;;  %vm1788_vm1 = vnez %v1781_v17 }
  0xe7   : > { %vm1626_vm13 = vmor %vm274_vm8, %vm314_vm0 }
  0xe8   : > { %v1584_v11 = vpop.permute.xlu1 %259  ;;  %v1787_v21 = vsel %vm1626_vm13, 4294967295, %v1786_v21 }
  0xe9   : > { %vm276_vm8 = vcmp.eq.s32.totalorder %v1478_v33, %v1584_v11 }
  0xed   : > { %v300_v13 = vpop.permute.xlu1 %299 }
  0xee   : > { %vm315_vm2 = vcmp.eq.s32.totalorder %v1473_v30, %v300_v13  ;;  %vm316_vm11 = vcmp.eq.s32.totalorder %v1478_v33, %v300_v13 }
  0xf2   : > { %v403_v14 = vpop.permute.xlu1 %402 }
  0xf3   : > { %vm421_vm10 = vcmp.eq.s32.totalorder %v1473_v30, %v403_v14  ;;  %vm422_vm7 = vcmp.eq.s32.totalorder %v1478_v33, %v403_v14 }
  0xf4   : > { %vm437_vm3 = vmor %vm381_vm6, %vm421_vm10 }
  0xf5   : > { %vm438_vm14 = vmor %vm382_vm9, %vm422_vm7  ;;  %vm275_vm9 = vcmp.eq.s32.totalorder %v1473_v30, %v1584_v11 }
  0xf6   : > { %vm493_vm4 = vmor %vm437_vm3, %vm477_vm12 }
  0xf7   : > { %v353_v16 = vpop.permute.xlu1 %352  ;;  %vm494_vm6 = vmor %vm438_vm14, %vm478_vm15  ;;  %v1054_v24 = vsel %vm493_vm4, 1.0, %v1292_v22  ;;  %vm1789_vm15 = vnez %v1783_v18 }
  0xf8   : > { %vm369_vm12 = vcmp.eq.s32.totalorder %v1473_v30, %v353_v16  ;;  %vm331_vm14 = vmor %vm275_vm9, %vm315_vm2  ;;  %v1055_v26 = vsel %vm494_vm6, 1.0, %v1292_v22  ;;  %vm370_vm4 = vcmp.eq.s32.totalorder %v1478_v33, %v353_v16  ;;  %vm427_vm2 = vcmp.eq.s32.totalorder %v1473_v30, %v412_v27 }
  0xf9   : > { %vm1790_vm6 = vcmask 179200  }
  0xfb   : > { %v356_v19 = vpop.permute.xlu1 %355 }
  0xfc   : > { %vm371_vm13 = vcmp.eq.s32.totalorder %v1473_v30, %v356_v19 }
 0x100   : > { %v462_v23 = vpop.permute.xlu1 %461 }
 0x101   : > { %vm479_vm10 = vcmp.eq.s32.totalorder %v1473_v30, %v462_v23  ;;  %vm480_vm7 = vcmp.eq.s32.totalorder %v1478_v33, %v462_v23 }
 0x102   : > { %vm495_vm0 = vmor %vm1788_vm1, %vm479_vm10  ;;  %vm372_vm1 = vcmp.eq.s32.totalorder %v1478_v33, %v356_v19 }
 0x103   : > { %vm496_vm3 = vmor %vm1789_vm15, %vm480_vm7  ;;  %v1056_v25 = vsel %vm495_vm0, 1.0, %v1292_v22  ;;  %vm428_vm15 = vcmp.eq.s32.totalorder %v1478_v33, %v412_v27 }
 0x104   : > { %v1057_v28 = vsel %vm496_vm3, 1.0, %v1292_v22  ;;  %v1098_v29 = vpack.c.bf16 %v1056_v25, %v1054_v24  ;;  %vm332_vm10 = vmor %vm276_vm8, %vm316_vm11  ;;  %vm1791_vm11 = vnez %v1787_v21 }
 0x105   : > { %v1099_v31 = vpack.c.bf16 %v1057_v28, %v1055_v26  ;;  %v409_v32 = vpop.permute.xlu1 %408  ;;  %vm385_vm7 = vmor %vm1622_vm5, %vm369_vm12 }
 0x106   : > { %vm387_vm0 = vmor %vm331_vm14, %vm371_vm13  ;;  %vm425_vm3 = vcmp.eq.s32.totalorder %v1473_v30, %v409_v32  ;;  %vm426_vm12 = vcmp.eq.s32.totalorder %v1478_v33, %v409_v32 }
 0x107   : > { %1083 = vmatprep.mubr.msk.bf16.mxu0 %vm1790_vm6, %v1099_v31  ;;  %vm388_vm9 = vmor %vm332_vm10, %vm372_vm1 }
 0x108   : > { %742 = vmatmul.mubr.bf16.gmra.mrb[8].mxu0 %v1098_v29  ;;  %vm386_vm8 = vmor %vm1791_vm11, %vm370_vm4 }
 0x109   : > { %vm443_vm5 = vmor %vm387_vm0, %vm427_vm2 }
 0x10a   : > { %v465_v34 = vpop.permute.xlu1 %464  ;;  %vm444_vm13 = vmor %vm388_vm9, %vm428_vm15 }
 0x10b   : > { %vm481_vm14 = vcmp.eq.s32.totalorder %v1473_v30, %v465_v34  ;;  %vm441_vm6 = vmor %vm385_vm7, %vm425_vm3  ;;  %vm482_vm1 = vcmp.eq.s32.totalorder %v1478_v33, %v465_v34  ;;  %vm1792_vm7 = vcmask 179200   ;;  %vm766_vm3 = vcmask 261120  }
 0x10c   : > { %vm442_vm10 = vmor %vm386_vm8, %vm426_vm12  ;;  %vm1293_vm8 = vmmov 0   ;;  %vm860_vm12 = vcmask 1042434  }
 0x10d   : > { %vm497_vm4 = vmor %vm441_vm6, %vm481_vm14  ;;  %vm864_vm14 = vcmask 1044484   ;;  %vm866_vm6 = vcmask 1045509  }
 0x10e   : > { %v468_v35 = vpop.permute.xlu1 %467  ;;  %vm498_vm11 = vmor %vm442_vm10, %vm482_vm1  ;;  %v1058_v36 = vsel %vm497_vm4, 1.0, %v1292_v22  ;;  %vm868_vm1 = vcmask 1046534   ;;  %vm870_vm10 = vcmask 1047559  }
 0x10f   : > { %vm483_vm0 = vcmp.eq.s32.totalorder %v1473_v30, %v468_v35  ;;  %vm484_vm2 = vcmp.eq.s32.totalorder %v1478_v33, %v468_v35  ;;  %v1059_v38 = vsel %vm498_vm11, 1.0, %v1292_v22  ;;  %v1217_v30 = vld [vmem:[%s1756_s3] sm:$0xff]   ;;  %v1218_v33 = vld [vmem:[%s1756_s3 + $0x8] sm:$0xff]  }
 0x110   : > { %vm499_vm9 = vmor %vm443_vm5, %vm483_vm0  ;;  %vm858_vm5 = vcmask 1041409  }
 0x111   : > { %vm500_vm15 = vmor %vm444_vm13, %vm484_vm2  ;;  %v1060_v37 = vsel %vm499_vm9, 1.0, %v1292_v22  ;;  %vm862_vm13 = vcmask 1043459  }
 0x112   : > { %v1061_v39 = vsel %vm500_vm15, 1.0, %v1292_v22  ;;  %v1100_v40 = vpack.c.bf16 %v1060_v37, %v1058_v36 }
 0x113   : > { %v1101_v41 = vpack.c.bf16 %v1061_v39, %v1059_v38 }
 0x115   : > { %1084 = vmatprep.mubr.msk.bf16.mxu1 %vm1792_vm7, %v1101_v41 }
 0x116   : > { %750 = vmatmul.mubr.bf16.vlgmr.msra.gmra.mrb[0].mxu1 %v1100_v40 }
 0x117   : > { %1106 = vmatpush3.bf16.msra.mxu1 %v1217_v30  ;;  %1109 = vmatprep.mubr.msk.bf16.mxu1 %vm1293_vm8, %v1292_v22 }
 0x118   : > { %1107 = vmatprep.subr.bf16.mxu1 %v1292_v22 }
 0x11b   : > { %1108 = vmatpush3.bf16.msra.mxu1 %v1218_v33 }
 0x18f   : > { %v727_v43 = vpop.f32.mrb[0].mxu0 }
 0x190   : > { %v728_v44 = vadd.f32 %v1679_v42, %v727_v43  ;;  %v729_v45 = vpop.f32.mrb[1].mxu0 }
 0x191   : > { %v730_v46 = vpop.f32.mrb[2].mxu0 }
 0x192   : > { %v758_v47 = vmax.f32 %v728_v44, 0.0  ;;  %v731_v48 = vadd.f32 %v1679_v42, %v730_v46  ;;  %v732_v49 = vpop.f32.mrb[3].mxu0 }
 0x194   : > { %v767_v50 = vsel %vm766_vm3, %v758_v47, -inf  ;;  %v759_v51 = vmax.f32 %v731_v48, 0.0 }
 0x195   : > { %v768_v22 = vrot.slane %v767_v50, 4 }
 0x196   : > { %v774_v52 = vsel %vm766_vm3, %v759_v51, -inf }
 0x197   : > { %v769_v53 = vmax.f32 %v767_v50, %v768_v22  ;;  %v775_v54 = vrot.slane %v774_v52, 4 }
 0x199   : > { %v770_v55 = vrot.slane %v769_v53, 2  ;;  %v776_v56 = vmax.f32 %v774_v52, %v775_v54 }
 0x19b   : > { %v771_v57 = vmax.f32 %v769_v53, %v770_v55  ;;  %v777_v58 = vrot.slane %v776_v56, 2 }
 0x19d   : > { %v772_v59 = vrot.slane %v771_v57, 1  ;;  %v778_v60 = vmax.f32 %v776_v56, %v777_v58 }
 0x19f   : > { %v773_v61 = vmax.f32 %v771_v57, %v772_v59  ;;  %v779_v62 = vrot.slane %v778_v60, 1 }
 0x1a1   : > { %v823_v63 = vpack.c.bf16 %v773_v61, %v773_v61  ;;  %v780_v0 = vmax.f32 %v778_v60, %v779_v62 }
 0x1a3   : > { %v824_v1 = vpack.c.bf16 %v780_v0, %v780_v0  ;;  %v949_v2 = vsel %vm858_vm5, %v780_v0, %v773_v61  ;;  %v850_v3 = vunpack.c.l.b16 %v823_v63 }
 0x1a5   : > { %v851_v4 = vunpack.c.l.b16 %v824_v1 }
 0x1a7   : > { %v859_v5 = vsel %vm858_vm5, %v851_v4, %v850_v3  ;;  %v735_v6 = vpop.f32.mrb[4].mxu0 }
 0x1a8   : > { %v736_v7 = vadd.f32 %v1679_v42, %v735_v6  ;;  %v737_v8 = vpop.f32.mrb[5].mxu0 }
 0x1a9   : > { %v738_v9 = vpop.f32.mrb[6].mxu0 }
 0x1aa   : > { %v760_v10 = vmax.f32 %v736_v7, 0.0  ;;  %v739_v11 = vadd.f32 %v1679_v42, %v738_v9  ;;  %v740_v12 = vpop.f32.mrb[7].mxu0 }
 0x1ac   : > { %v781_v13 = vsel %vm766_vm3, %v760_v10, -inf  ;;  %v761_v14 = vmax.f32 %v739_v11, 0.0 }
 0x1ad   : > { %v782_v15 = vrot.slane %v781_v13, 4 }
 0x1ae   : > { %v788_v16 = vsel %vm766_vm3, %v761_v14, -inf }
 0x1af   : > { %v783_v17 = vmax.f32 %v781_v13, %v782_v15  ;;  %v789_v18 = vrot.slane %v788_v16, 4 }
 0x1b1   : > { %v784_v19 = vrot.slane %v783_v17, 2  ;;  %v790_v20 = vmax.f32 %v788_v16, %v789_v18 }
 0x1b3   : > { %v785_v21 = vmax.f32 %v783_v17, %v784_v19  ;;  %v791_v23 = vrot.slane %v790_v20, 2 }
 0x1b5   : > { %v786_v24 = vrot.slane %v785_v21, 1  ;;  %v792_v25 = vmax.f32 %v790_v20, %v791_v23 }
 0x1b7   : > { %v787_v26 = vmax.f32 %v785_v21, %v786_v24  ;;  %v793_v27 = vrot.slane %v792_v25, 1 }
 0x1b9   : > { %v825_v28 = vpack.c.bf16 %v787_v26, %v787_v26  ;;  %v950_v29 = vsel %vm860_vm12, %v787_v26, %v949_v2  ;;  %v794_v31 = vmax.f32 %v792_v25, %v793_v27 }
 0x1bb   : > { %v852_v32 = vunpack.c.l.b16 %v825_v28  ;;  %v826_v34 = vpack.c.bf16 %v794_v31, %v794_v31  ;;  %v951_v35 = vsel %vm862_vm13, %v794_v31, %v950_v29 }
 0x1bd   : > { %v861_v36 = vsel %vm860_vm12, %v852_v32, %v859_v5  ;;  %v853_v37 = vunpack.c.l.b16 %v826_v34 }
 0x1bf   : > { %v863_v38 = vsel %vm862_vm13, %v853_v37, %v861_v36  ;;  %v1085_v36 = vld [vmem:[%s1757_s4] ss:$0 sm:$0xff] }
 0x1db   : > { %v743_v39 = vpop.f32.mrb[8].mxu0 }
 0x1dc   : > { %v744_v40 = vadd.f32 %v1679_v42, %v743_v39  ;;  %v745_v41 = vpop.f32.mrb[9].mxu0 }
 0x1dd   : > { %v746_v30 = vpop.f32.mrb[10].mxu0 }
 0x1de   : > { %v762_v33 = vmax.f32 %v744_v40, 0.0  ;;  %v747_v43 = vadd.f32 %v1679_v42, %v746_v30  ;;  %v748_v44 = vpop.f32.mrb[11].mxu0 }
 0x1e0   : > { %v795_v45 = vsel %vm766_vm3, %v762_v33, -inf  ;;  %v763_v46 = vmax.f32 %v747_v43, 0.0 }
 0x1e1   : > { %v796_v47 = vrot.slane %v795_v45, 4 }
 0x1e2   : > { %v802_v48 = vsel %vm766_vm3, %v763_v46, -inf }
 0x1e3   : > { %v797_v49 = vmax.f32 %v795_v45, %v796_v47  ;;  %v803_v50 = vrot.slane %v802_v48, 4 }
 0x1e5   : > { %v798_v51 = vrot.slane %v797_v49, 2  ;;  %v804_v22 = vmax.f32 %v802_v48, %v803_v50 }
 0x1e7   : > { %v799_v52 = vmax.f32 %v797_v49, %v798_v51  ;;  %v805_v53 = vrot.slane %v804_v22, 2 }
 0x1e9   : > { %v800_v54 = vrot.slane %v799_v52, 1  ;;  %v806_v55 = vmax.f32 %v804_v22, %v805_v53  ;;  %v751_v56 = vpop.f32.mrb[0].mxu1 }
 0x1ea   : > { %v752_v57 = vadd.f32 %v1679_v42, %v751_v56  ;;  %v753_v58 = vpop.f32.mrb[1].mxu1 }
 0x1eb   : > { %v801_v59 = vmax.f32 %v799_v52, %v800_v54  ;;  %v807_v60 = vrot.slane %v806_v55, 1  ;;  %v754_v61 = vpop.f32.mrb[2].mxu1 }
 0x1ec   : > { %v764_v62 = vmax.f32 %v752_v57, 0.0  ;;  %v755_v63 = vadd.f32 %v1679_v42, %v754_v61  ;;  %v756_v0 = vpop.f32.mrb[3].mxu1 }
 0x1ed   : > { %v827_v1 = vpack.c.bf16 %v801_v59, %v801_v59  ;;  %v808_v2 = vmax.f32 %v806_v55, %v807_v60  ;;  %v952_v3 = vsel %vm864_vm14, %v801_v59, %v951_v35 }
 0x1ee   : > { %v809_v4 = vsel %vm766_vm3, %v764_v62, -inf  ;;  %v765_v5 = vmax.f32 %v755_v63, 0.0 }
 0x1ef   : > { %v854_v6 = vunpack.c.l.b16 %v827_v1  ;;  %v828_v7 = vpack.c.bf16 %v808_v2, %v808_v2  ;;  %v810_v8 = vrot.slane %v809_v4, 4  ;;  %v953_v9 = vsel %vm866_vm6, %v808_v2, %v952_v3 }
 0x1f0   : > { %v816_v10 = vsel %vm766_vm3, %v765_v5, -inf }
 0x1f1   : > { %v855_v11 = vunpack.c.l.b16 %v828_v7  ;;  %v811_v12 = vmax.f32 %v809_v4, %v810_v8  ;;  %v817_v13 = vrot.slane %v816_v10, 4  ;;  %v865_v42 = vsel %vm864_vm14, %v854_v6, %v863_v38 }
 0x1f3   : > { %v812_v14 = vrot.slane %v811_v12, 2  ;;  %v818_v15 = vmax.f32 %v816_v10, %v817_v13  ;;  %v867_v16 = vsel %vm866_vm6, %v855_v11, %v865_v42 }
 0x1f5   : > { %v813_v17 = vmax.f32 %v811_v12, %v812_v14  ;;  %v819_v18 = vrot.slane %v818_v15, 2 }
 0x1f7   : > { %v814_v19 = vrot.slane %v813_v17, 1  ;;  %v820_v20 = vmax.f32 %v818_v15, %v819_v18 }
 0x1f9   : > { %v815_v21 = vmax.f32 %v813_v17, %v814_v19  ;;  %v821_v23 = vrot.slane %v820_v20, 1 }
 0x1fb   : > { %v829_v24 = vpack.c.bf16 %v815_v21, %v815_v21  ;;  %v822_v25 = vmax.f32 %v820_v20, %v821_v23  ;;  %v954_v26 = vsel %vm868_vm1, %v815_v21, %v953_v9 }
 0x1fd   : > { %v856_v27 = vunpack.c.l.b16 %v829_v24  ;;  %v830_v28 = vpack.c.bf16 %v822_v25, %v822_v25  ;;  %v955_v29 = vsel %vm870_vm10, %v822_v25, %v954_v26 }
 0x1fe   : > { %956 = vrot.lane.b32.xlu1 %v955_v29, %s1294_s26 }
 0x1ff   : > { %v857_v31 = vunpack.c.l.b16 %v830_v28  ;;  %v869_v32 = vsel %vm868_vm1, %v856_v27, %v867_v16 }
 0x201   : > { %v871_v34 = vsel %vm870_vm10, %v857_v31, %v869_v32 }
 0x202   : > { %v872_v35 = vpack.c.b16 %v871_v34, %v871_v34 }
 0x204   : > { %1110 = vmatmul.mubr.msk.bf16.vlgmr.msra.gmra.mrb[4].mxu1 %vm766_vm3, %v872_v35 }
 0x270   : > { %v957_v47 = vpop.permute.xlu1 %956 }
 0x2d7   : > { %v922_v37 = vpop.f32.mrb[4].mxu1 }
 0x2d8   : > { %v923_v38 = vadd.f32 %v1085_v36, %v922_v37  ;;  %v1111_v39 = vpop.f32.mrb[5].mxu1 }
 0x2d9   : > { %v925_v40 = vpop.f32.mrb[6].mxu1 }
 0x2da   : > { %v928_v41 = vmax.f32 %v923_v38, 0.0  ;;  %v1112_v30 = vpop.f32.mrb[7].mxu1  ;;  %v1089_v33 = vmul.f32 -1.442695, %v923_v38 }
 0x2dc   : > { %936 = vrot.lane.b32.xlu0 %v928_v41, %s1294_s26  ;;  %1219 = vpow2.f32 %v1089_v33 }
 0x2e6   : > { %v1220_v43 = vpop.eup %1219 }
 0x2e7   : > { %v932_v44 = vadd.f32 1.0, %v1220_v43 }
 0x2e9   : > { %1221 = vrcp.f32 %v932_v44 }
 0x2f3   : > { %v1222_v45 = vpop.eup %1221 }
 0x2f4   : > { %v940_v46 = vsub.f32 1.0, %v1222_v45 }
 0x2f6   : > { %v959_v49 = vmul.f32 %v957_v47, %v940_v46 }
 0x34e   : > { %v937_v48 = vpop.permute.xlu0 %936 }
 0x34f   : > { %v939_v50 = vmul.f32 %v1222_v45, %v937_v48 }
 0x351   : > { %v960_v51 = vadd.f32 %v959_v49, %v939_v50 }
 0x353   : > { %962 = vrot.lane.b32.xlu0 %v960_v51, %s1295_s7 }
 0x3c5   : > { %v963_v22 = vpop.permute.xlu0 %962 }
 0x3c6   : > { %965 = vst.msk [vmem:[%s218_s11] sm:$0xff] %vm766_vm3, %v963_v22 }
 0x3c7   : > { %1236 = shalt.err (!%p1233_p3)
}
 0x3c8   : > { %s1237_s26 = scalar_lea.hbm %s1710_s15, 128  ;;  %s1241_s7 = scalar_lea.hbm %s1758_s5, 256 }
 0x3c9   : > { %p1238_p4 = scmp.ne.s32.totalorder %s1710_s15, %s1237_s26  ;;  %p1242_p9 = scmp.lt.u32.totalorder %s1710_s15, %s1758_s5 }
 0x3ca   : > { %p1243_p10 = scmp.lt.u32.totalorder %s1241_s7, %s1237_s26  ;;  %p1245_p12 = scmp.lt.u32.totalorder %s1237_s26, %s1710_s15 }
 0x3cb   : > { %p1239_p7 = pnand %p1238_p4, %p1365_p5 }
 0x3cc   : > { %p1244_p11 = por %p1243_p10, %p1242_p9 }
 0x3cd   : > { %p1240_p8 = pneg %p1239_p7 }
 0x3ce   : > { %p1246_p13 = por %p1245_p12, %p1244_p11 }
 0x3d0   : > { %p1247_p0 = pnand %p1246_p13, %p1240_p8 }
 0x3d2   : > { %1250 = shalt.err (!%p1247_p0)
}
 0x3d3   : > { %1133 = dma.vmem_to_hbm [thread:$0]  (%p1365_p5), %s1712_s12, 128, %s1710_s15, %s967_s16  }
 0x3d4 PF: > { %p1139_p1 = scmp.ge.s32.totalorder %s1285_s21, 2  ;;  %s992_s10 = sand.u32 1, %s1273_s18  }
 0x3d5   : > { %s993_s11 = scalar_lea.sflag [#allocation3], %s992_s10 }
 0x3d6   : > { %p1136_p2 = pnand %p1139_p1, %p1369_p6 }
 0x3d8   : > { %1268 = dma.done.wait (!%p1136_p2), %s993_s11, 128  }
 0x3d9   : > { %1270 = vsyncadd (!%p1136_p2), %s993_s11, 4294967168  ;;  %p15_p3 = scmp.ge.s32.totalorder %s1352_s24, 4   ;;  %s1793_s18 = smov %s1277_s19 }
 0x3da   : > { %s1794_s19 = smov %s1281_s20  ;;  %s1795_s20 = smov %s1363_s27 }
 0x3db   : > { %s1796_s21 = smov %s1352_s24  ;;  %17 = sbr.rel (!%p15_p3) target bundleno = 3 (0x3), region = 75 }
 0x3e2   :  { %998 = vsyncpa [#allocation3], 1 }
 0x3e3   :  { %1000 = vsyncpa [#allocation3 + $0x1], 1 }

</bundles_post_ra>
